<compile_context>
chip_gen: v7x
topology: tpu7x:2x2x1
jax: 0.10.0
libtpu: 0.0.40
codegen_flags: <defaults>
</compile_context>

<pallas_src>
import jax
import jax.numpy as jnp
from jax import lax
from jax.experimental import pallas as pl
from jax.experimental.pallas import tpu as pltpu

INPUT_SIZE = 8    # matches module: input_size = 8
HIDDEN = 32       # matches module: intermediate_size = 32


def _softplus(x):
    # numerically stable softplus, matches F.softplus default behaviour
    return jnp.maximum(x, 0.0) + jnp.log1p(jnp.exp(-jnp.abs(x)))


def _make_kernel(T, B, F):
    """Builds the fused kernel for static (T, B, F). B is per-branch batch."""
    B2 = 2 * B
    H = HIDDEN
    SLAB_ROWS = ((B2 + 1 + 7) // 8) * 8   # one (8,128)-aligned output tile

    def kernel(f1_ref, f2_ref, l1_ref, l2_ref, golds_ref,
               w_ih_ref, w_hh_ref, b_lstm_ref,
               w1_ref, b1_ref, w2_ref, b2_ref,
               out_ref):
        w_ih = w_ih_ref[...]      # [F, 4H]  bf16
        w_hh = w_hh_ref[...]      # [H, 4H]  bf16
        b_l = b_lstm_ref[...]     # [1, 4H]  f32
        w1 = w1_ref[...]          # [H, H]   bf16
        b1 = b1_ref[...]          # [1, H]   f32
        w2 = w2_ref[...]          # [1, H]   f32 (row vector)
        b2 = b2_ref[...]          # [1, 1]   f32

        # ---- fuse the two branches in-kernel: rows 0..B-1 = id1, B..2B-1 = id2
        feat = jnp.concatenate([f1_ref[...], f2_ref[...]], axis=1)     # [T,2B,F]
        seq_len = jnp.concatenate([l1_ref[...], l2_ref[...]], axis=0)  # [2B,1]

        # ---- hoisted, state-independent constants --------------------------
        # validity mask: valid[t, b, :] = (t < seq_len[b]); ONE compare total
        t_iota = lax.broadcasted_iota(jnp.int32, (T, B2, H), 0)
        valid = t_iota < seq_len.reshape(1, B2, 1)                     # [T,2B,H]

        # lane mask selecting the g-gate (tanh) columns of the 4H gate vector
        lane4h = lax.broadcasted_iota(jnp.int32, (B2, 4 * H), 1)
        is_g = (lane4h >= 2 * H) & (lane4h < 3 * H)                    # [2B,4H]
        pre = jnp.where(is_g, 1.0, 0.5).astype(jnp.float32)            # pre-scale

        # ---- single fused LSTM recurrence over both branches ----------------
        h = jnp.zeros((B2, H), jnp.float32)
        c = jnp.zeros((B2, H), jnp.float32)

        for t in range(T):  # static unroll; everything stays in vregs
            x_t = feat[t].astype(jnp.bfloat16)                          # [2B,F]
            gx_t = jnp.dot(x_t, w_ih,
                           preferred_element_type=jnp.float32) + b_l    # [2B,4H]
            gates = gx_t + jnp.dot(h.astype(jnp.bfloat16), w_hh,
                                   preferred_element_type=jnp.float32)  # [2B,4H]
            # one EUP tanh for all four gates:
            #   g lanes: tanh(gates);  i/f/o lanes: sigmoid(gates)=0.5*tanh(0.5g)+0.5
            r = jnp.tanh(gates * pre)
            act = jnp.where(is_g, r, 0.5 * r + 0.5)
            i_g = act[:, 0 * H:1 * H]
            f_g = act[:, 1 * H:2 * H]
            g_g = act[:, 2 * H:3 * H]
            o_g = act[:, 3 * H:4 * H]
            c_new = f_g * c + i_g * g_g
            h_new = o_g * jnp.tanh(c_new)
            m = valid[t]                       # [2B,H] bool, hoisted compare
            h = jnp.where(m, h_new, h)         # freeze state past seq_len
            c = jnp.where(m, c_new, c)

        # ---- predictor MLP on both branches at once: 32 -> 32 (ReLU) -> 1 ---
        hid = jnp.maximum(
            jnp.dot(h.astype(jnp.bfloat16), w1,
                    preferred_element_type=jnp.float32) + b1, 0.0)      # [2B,H]
        # 1-wide output: VPU multiply + lane reduce instead of an MXU matmul
        score = jnp.sum(hid * w2, axis=-1, keepdims=True) + b2          # [2B,1]

        s1 = score[:B, :]    # score_id1  [B,1]
        s2 = score[B:, :]    # score_id2  [B,1]

        # pairwise RankNet loss:  mean( -golds * o + softplus(o) ),  o = s1 - s2
        golds = golds_ref[...]                                          # [B,1]
        o = s1 - s2
        loss = jnp.mean(-golds * o + _softplus(o))

        # ---- pack all tiny outputs into ONE lane-dense slab -----------------
        #   column 0, rows 0..2B-1 : scores (id1 rows then id2 rows)
        #   column 0, row 2B       : loss
        pieces = [score, loss.reshape(1, 1)]
        pad_rows = SLAB_ROWS - B2 - 1
        if pad_rows > 0:
            pieces.append(jnp.zeros((pad_rows, 1), jnp.float32))
        col = jnp.concatenate(pieces, axis=0)                           # [ROWS,1]
        lane = lax.broadcasted_iota(jnp.int32, (SLAB_ROWS, 128), 1)
        out_ref[...] = jnp.where(lane == 0, col, 0.0)   # one unmasked store

    return kernel, SLAB_ROWS


def init_params(key):
    ks = jax.random.split(key, 7)
    bound = 1.0 / float(HIDDEN) ** 0.5

    def u(k, shape, dtype=jnp.float32):
        return jax.random.uniform(k, shape, jnp.float32, -bound, bound).astype(dtype)

    return dict(
        # matmul weights in bf16 (MXU-native); biases / reduce weights in f32
        w_ih=u(ks[0], (INPUT_SIZE, 4 * HIDDEN), jnp.bfloat16),
        w_hh=u(ks[1], (HIDDEN, 4 * HIDDEN), jnp.bfloat16),
        b_lstm=u(ks[2], (1, 4 * HIDDEN)),        # fused b_ih + b_hh
        w1=u(ks[3], (HIDDEN, HIDDEN), jnp.bfloat16),
        b1=u(ks[4], (1, HIDDEN)),
        w2=u(ks[5], (1, HIDDEN)),                # row vector for lane reduce
        b2=u(ks[6], (1, 1)),
    )


@jax.jit
def main_model_forward(feat1, feat2, len1, len2, golds, params):
    T, B, F = feat1.shape
    kernel, slab_rows = _make_kernel(T, B, F)

    vmem = pl.BlockSpec(memory_space=pltpu.MemorySpace.VMEM)  # whole-array block

    # Advisory cost hint for the XLA scheduler around this tiny custom call.
    B2, H = 2 * B, HIDDEN
    flops = (2 * T * B2 * F * 4 * H          # x-projection
             + 2 * T * B2 * H * 4 * H        # recurrence h @ W_hh
             + 2 * B2 * H * H + 2 * B2 * H)  # predictor
    transcendentals = T * B2 * 5 * H + B
    bytes_accessed = (4 * (feat1.size + feat2.size + len1.size + len2.size
                           + golds.size + slab_rows * 128)
                      + 2 * (params['w_ih'].size + params['w_hh'].size
                             + params['w1'].size)
                      + 4 * (params['b_lstm'].size + params['b1'].size
                             + params['w2'].size + params['b2'].size))
    cost = pl.CostEstimate(flops=flops, transcendentals=transcendentals,
                           bytes_accessed=bytes_accessed)

    slab = pl.pallas_call(
        kernel,
        out_shape=jax.ShapeDtypeStruct((slab_rows, 128), jnp.float32),
        in_specs=[vmem] * 12,
        out_specs=vmem,
        cost_estimate=cost,
    )(feat1, feat2,
      len1.astype(jnp.int32), len2.astype(jnp.int32), golds,
      params['w_ih'], params['w_hh'], params['b_lstm'],
      params['w1'], params['b1'], params['w2'], params['b2'])

    # unpack the slab in the wrapper (cheap, fuses into surrounding XLA)
    col = slab[:, 0]
    s1 = col[0:B]
    s2 = col[B:2 * B]
    loss = col[2 * B]
    scores = jnp.stack([s1, s2], axis=1)          # cat([score_id1, score_id2], 1)
    y_hat = jnp.argmin(scores, axis=-1)           # ties -> index 0 (torch.argmin)
    return loss, y_hat, scores


if __name__ == "__main__":
    key = jax.random.PRNGKey(0)
    k_f1, k_f2, k_p = jax.random.split(key, 3)

    B, T = 2, 8  # small batch, seq length 8
    feat1 = jax.random.normal(k_f1, (T, B, INPUT_SIZE), jnp.float32)
    feat2 = jax.random.normal(k_f2, (T, B, INPUT_SIZE), jnp.float32)
    len1 = jnp.array([[T], [T - 3]], jnp.int32)      # variable valid lengths
    len2 = jnp.array([[T - 1], [T]], jnp.int32)
    golds = jnp.array([[1.0], [-1.0]], jnp.float32)  # RankNet pairwise labels

    params = init_params(k_p)
    loss, y_hat, scores = main_model_forward(feat1, feat2, len1, len2, golds,
                                             params)
    jax.block_until_ready((loss, y_hat, scores))
    print("KERNEL_OK")
</pallas_src>

<mosaic_0001>
module attributes {stable_mosaic.version = 11 : i64} {
  func.func @kernel(%arg0: memref<8x2x8xf32, #tpu.memory_space<vmem>>, %arg1: memref<8x2x8xf32, #tpu.memory_space<vmem>>, %arg2: memref<2x1xi32, #tpu.memory_space<vmem>>, %arg3: memref<2x1xi32, #tpu.memory_space<vmem>>, %arg4: memref<2x1xf32, #tpu.memory_space<vmem>>, %arg5: memref<8x128xbf16, #tpu.memory_space<vmem>>, %arg6: memref<32x128xbf16, #tpu.memory_space<vmem>>, %arg7: memref<1x128xf32, #tpu.memory_space<vmem>>, %arg8: memref<32x32xbf16, #tpu.memory_space<vmem>>, %arg9: memref<1x32xf32, #tpu.memory_space<vmem>>, %arg10: memref<1x32xf32, #tpu.memory_space<vmem>>, %arg11: memref<1x1xf32, #tpu.memory_space<vmem>>, %arg12: memref<8x128xf32, #tpu.memory_space<vmem>>) attributes {dimension_semantics = [], scalar_prefetch = 0 : i64, scratch_operands = 0 : i64, tpu.core_type = #tpu.core_type<tc>} {
    %c0 = arith.constant 0 : index
    %c0_0 = arith.constant 0 : index
    %0 = vector.load %arg5[%c0, %c0_0] : memref<8x128xbf16, #tpu.memory_space<vmem>>, vector<8x128xbf16>
    %c0_1 = arith.constant 0 : index
    %c0_2 = arith.constant 0 : index
    %1 = vector.load %arg6[%c0_1, %c0_2] : memref<32x128xbf16, #tpu.memory_space<vmem>>, vector<32x128xbf16>
    %c0_3 = arith.constant 0 : index
    %c0_4 = arith.constant 0 : index
    %2 = vector.load %arg7[%c0_3, %c0_4] : memref<1x128xf32, #tpu.memory_space<vmem>>, vector<1x128xf32>
    %c0_5 = arith.constant 0 : index
    %c0_6 = arith.constant 0 : index
    %3 = vector.load %arg8[%c0_5, %c0_6] : memref<32x32xbf16, #tpu.memory_space<vmem>>, vector<32x32xbf16>
    %c0_7 = arith.constant 0 : index
    %c0_8 = arith.constant 0 : index
    %4 = vector.load %arg9[%c0_7, %c0_8] : memref<1x32xf32, #tpu.memory_space<vmem>>, vector<1x32xf32>
    %c0_9 = arith.constant 0 : index
    %c0_10 = arith.constant 0 : index
    %5 = vector.load %arg10[%c0_9, %c0_10] : memref<1x32xf32, #tpu.memory_space<vmem>>, vector<1x32xf32>
    %c0_11 = arith.constant 0 : index
    %c0_12 = arith.constant 0 : index
    %6 = vector.load %arg11[%c0_11, %c0_12] : memref<1x1xf32, #tpu.memory_space<vmem>>, vector<1x1xf32>
    %c0_13 = arith.constant 0 : index
    %c0_14 = arith.constant 0 : index
    %c0_15 = arith.constant 0 : index
    %7 = vector.load %arg0[%c0_13, %c0_14, %c0_15] : memref<8x2x8xf32, #tpu.memory_space<vmem>>, vector<8x2x8xf32>
    %c0_16 = arith.constant 0 : index
    %c0_17 = arith.constant 0 : index
    %c0_18 = arith.constant 0 : index
    %8 = vector.load %arg1[%c0_16, %c0_17, %c0_18] : memref<8x2x8xf32, #tpu.memory_space<vmem>>, vector<8x2x8xf32>
    %9 = tpu.concatenate %7, %8 in 1 : vector<8x2x8xf32>, vector<8x2x8xf32> -> vector<8x4x8xf32>
    %c0_19 = arith.constant 0 : index
    %c0_20 = arith.constant 0 : index
    %10 = vector.load %arg2[%c0_19, %c0_20] : memref<2x1xi32, #tpu.memory_space<vmem>>, vector<2x1xi32>
    %c0_21 = arith.constant 0 : index
    %c0_22 = arith.constant 0 : index
    %11 = vector.load %arg3[%c0_21, %c0_22] : memref<2x1xi32, #tpu.memory_space<vmem>>, vector<2x1xi32>
    %12 = tpu.concatenate %10, %11 in 0 : vector<2x1xi32>, vector<2x1xi32> -> vector<4x1xi32>
    %13 = tpu.iota {dimensions = array<i32: 0>} : vector<8x4x32xi32>
    %14 = vector.shape_cast %12 : vector<4x1xi32> to vector<1x4x1xi32>
    %15 = vector.broadcast %14 : vector<1x4x1xi32> to vector<8x4x32xi32>
    %16 = arith.cmpi slt, %13, %15 : vector<8x4x32xi32>
    %17 = tpu.iota {dimensions = array<i32: 1>} : vector<4x128xi32>
    %c64_i32 = arith.constant 64 : i32
    %18 = vector.broadcast %c64_i32 : i32 to vector<4x128xi32>
    %19 = arith.cmpi sge, %17, %18 : vector<4x128xi32>
    %c96_i32 = arith.constant 96 : i32
    %20 = vector.broadcast %c96_i32 : i32 to vector<4x128xi32>
    %21 = arith.cmpi slt, %17, %20 : vector<4x128xi32>
    %22 = arith.andi %19, %21 : vector<4x128xi1>
    %cst = arith.constant 1.000000e+00 : f32
    %cst_23 = arith.constant 5.000000e-01 : f32
    %23 = vector.broadcast %cst : f32 to vector<4x128xf32>
    %24 = vector.broadcast %cst_23 : f32 to vector<4x128xf32>
    %25 = arith.select %22, %23, %24 : vector<4x128xi1>, vector<4x128xf32>
    %cst_24 = arith.constant 0.000000e+00 : f32
    %26 = vector.broadcast %cst_24 : f32 to vector<4x32xf32>
    %cst_25 = arith.constant 0.000000e+00 : f32
    %27 = vector.broadcast %cst_25 : f32 to vector<4x32xf32>
    %28 = vector.extract_strided_slice %9 {offsets = [0, 0, 0], sizes = [1, 4, 8], strides = [1, 1, 1]} : vector<8x4x8xf32> to vector<1x4x8xf32>
    %29 = vector.shape_cast %28 : vector<1x4x8xf32> to vector<4x8xf32>
    %30 = arith.truncf %29 : vector<4x8xf32> to vector<4x8xbf16>
    %cst_26 = arith.constant dense<0.000000e+00> : vector<4x128xf32>
    %31 = tpu.matmul %30, %0, %cst_26 {dimension_numbers = #tpu.dot_dimension_numbers<[1], [0], [0], [1], [0, 0, 1, 1], [], []>} : vector<4x8xbf16>, vector<8x128xbf16>, vector<4x128xf32> -> vector<4x128xf32>
    %32 = vector.broadcast %2 : vector<1x128xf32> to vector<4x128xf32>
    %33 = arith.addf %31, %32 : vector<4x128xf32>
    %34 = arith.truncf %26 : vector<4x32xf32> to vector<4x32xbf16>
    %cst_27 = arith.constant dense<0.000000e+00> : vector<4x128xf32>
    %35 = tpu.matmul %34, %1, %cst_27 {dimension_numbers = #tpu.dot_dimension_numbers<[1], [0], [0], [1], [0, 0, 1, 1], [], []>} : vector<4x32xbf16>, vector<32x128xbf16>, vector<4x128xf32> -> vector<4x128xf32>
    %36 = arith.addf %33, %35 : vector<4x128xf32>
    %37 = arith.mulf %36, %25 : vector<4x128xf32>
    %38 = math.tanh %37 : vector<4x128xf32>
    %cst_28 = arith.constant 5.000000e-01 : f32
    %39 = vector.broadcast %cst_28 : f32 to vector<4x128xf32>
    %40 = arith.mulf %39, %38 : vector<4x128xf32>
    %cst_29 = arith.constant 5.000000e-01 : f32
    %41 = vector.broadcast %cst_29 : f32 to vector<4x128xf32>
    %42 = arith.addf %40, %41 : vector<4x128xf32>
    %43 = arith.select %22, %38, %42 : vector<4x128xi1>, vector<4x128xf32>
    %44 = vector.extract_strided_slice %43 {offsets = [0, 0], sizes = [4, 32], strides = [1, 1]} : vector<4x128xf32> to vector<4x32xf32>
    %45 = vector.extract_strided_slice %43 {offsets = [0, 32], sizes = [4, 32], strides = [1, 1]} : vector<4x128xf32> to vector<4x32xf32>
    %46 = vector.extract_strided_slice %43 {offsets = [0, 64], sizes = [4, 32], strides = [1, 1]} : vector<4x128xf32> to vector<4x32xf32>
    %47 = vector.extract_strided_slice %43 {offsets = [0, 96], sizes = [4, 32], strides = [1, 1]} : vector<4x128xf32> to vector<4x32xf32>
    %48 = arith.mulf %45, %27 : vector<4x32xf32>
    %49 = arith.mulf %44, %46 : vector<4x32xf32>
    %50 = arith.addf %48, %49 : vector<4x32xf32>
    %51 = math.tanh %50 : vector<4x32xf32>
    %52 = arith.mulf %47, %51 : vector<4x32xf32>
    %53 = vector.extract_strided_slice %16 {offsets = [0, 0, 0], sizes = [1, 4, 32], strides = [1, 1, 1]} : vector<8x4x32xi1> to vector<1x4x32xi1>
    %54 = vector.shape_cast %53 : vector<1x4x32xi1> to vector<4x32xi1>
    %55 = arith.select %54, %52, %26 : vector<4x32xi1>, vector<4x32xf32>
    %56 = arith.select %54, %50, %27 : vector<4x32xi1>, vector<4x32xf32>
    %57 = vector.extract_strided_slice %9 {offsets = [1, 0, 0], sizes = [1, 4, 8], strides = [1, 1, 1]} : vector<8x4x8xf32> to vector<1x4x8xf32>
    %58 = vector.shape_cast %57 : vector<1x4x8xf32> to vector<4x8xf32>
    %59 = arith.truncf %58 : vector<4x8xf32> to vector<4x8xbf16>
    %cst_30 = arith.constant dense<0.000000e+00> : vector<4x128xf32>
    %60 = tpu.matmul %59, %0, %cst_30 {dimension_numbers = #tpu.dot_dimension_numbers<[1], [0], [0], [1], [0, 0, 1, 1], [], []>} : vector<4x8xbf16>, vector<8x128xbf16>, vector<4x128xf32> -> vector<4x128xf32>
    %61 = vector.broadcast %2 : vector<1x128xf32> to vector<4x128xf32>
    %62 = arith.addf %60, %61 : vector<4x128xf32>
    %63 = arith.truncf %55 : vector<4x32xf32> to vector<4x32xbf16>
    %cst_31 = arith.constant dense<0.000000e+00> : vector<4x128xf32>
    %64 = tpu.matmul %63, %1, %cst_31 {dimension_numbers = #tpu.dot_dimension_numbers<[1], [0], [0], [1], [0, 0, 1, 1], [], []>} : vector<4x32xbf16>, vector<32x128xbf16>, vector<4x128xf32> -> vector<4x128xf32>
    %65 = arith.addf %62, %64 : vector<4x128xf32>
    %66 = arith.mulf %65, %25 : vector<4x128xf32>
    %67 = math.tanh %66 : vector<4x128xf32>
    %cst_32 = arith.constant 5.000000e-01 : f32
    %68 = vector.broadcast %cst_32 : f32 to vector<4x128xf32>
    %69 = arith.mulf %68, %67 : vector<4x128xf32>
    %cst_33 = arith.constant 5.000000e-01 : f32
    %70 = vector.broadcast %cst_33 : f32 to vector<4x128xf32>
    %71 = arith.addf %69, %70 : vector<4x128xf32>
    %72 = arith.select %22, %67, %71 : vector<4x128xi1>, vector<4x128xf32>
    %73 = vector.extract_strided_slice %72 {offsets = [0, 0], sizes = [4, 32], strides = [1, 1]} : vector<4x128xf32> to vector<4x32xf32>
    %74 = vector.extract_strided_slice %72 {offsets = [0, 32], sizes = [4, 32], strides = [1, 1]} : vector<4x128xf32> to vector<4x32xf32>
    %75 = vector.extract_strided_slice %72 {offsets = [0, 64], sizes = [4, 32], strides = [1, 1]} : vector<4x128xf32> to vector<4x32xf32>
    %76 = vector.extract_strided_slice %72 {offsets = [0, 96], sizes = [4, 32], strides = [1, 1]} : vector<4x128xf32> to vector<4x32xf32>
    %77 = arith.mulf %74, %56 : vector<4x32xf32>
    %78 = arith.mulf %73, %75 : vector<4x32xf32>
    %79 = arith.addf %77, %78 : vector<4x32xf32>
    %80 = math.tanh %79 : vector<4x32xf32>
    %81 = arith.mulf %76, %80 : vector<4x32xf32>
    %82 = vector.extract_strided_slice %16 {offsets = [1, 0, 0], sizes = [1, 4, 32], strides = [1, 1, 1]} : vector<8x4x32xi1> to vector<1x4x32xi1>
    %83 = vector.shape_cast %82 : vector<1x4x32xi1> to vector<4x32xi1>
    %84 = arith.select %83, %81, %55 : vector<4x32xi1>, vector<4x32xf32>
    %85 = arith.select %83, %79, %56 : vector<4x32xi1>, vector<4x32xf32>
    %86 = vector.extract_strided_slice %9 {offsets = [2, 0, 0], sizes = [1, 4, 8], strides = [1, 1, 1]} : vector<8x4x8xf32> to vector<1x4x8xf32>
    %87 = vector.shape_cast %86 : vector<1x4x8xf32> to vector<4x8xf32>
    %88 = arith.truncf %87 : vector<4x8xf32> to vector<4x8xbf16>
    %cst_34 = arith.constant dense<0.000000e+00> : vector<4x128xf32>
    %89 = tpu.matmul %88, %0, %cst_34 {dimension_numbers = #tpu.dot_dimension_numbers<[1], [0], [0], [1], [0, 0, 1, 1], [], []>} : vector<4x8xbf16>, vector<8x128xbf16>, vector<4x128xf32> -> vector<4x128xf32>
    %90 = vector.broadcast %2 : vector<1x128xf32> to vector<4x128xf32>
    %91 = arith.addf %89, %90 : vector<4x128xf32>
    %92 = arith.truncf %84 : vector<4x32xf32> to vector<4x32xbf16>
    %cst_35 = arith.constant dense<0.000000e+00> : vector<4x128xf32>
    %93 = tpu.matmul %92, %1, %cst_35 {dimension_numbers = #tpu.dot_dimension_numbers<[1], [0], [0], [1], [0, 0, 1, 1], [], []>} : vector<4x32xbf16>, vector<32x128xbf16>, vector<4x128xf32> -> vector<4x128xf32>
    %94 = arith.addf %91, %93 : vector<4x128xf32>
    %95 = arith.mulf %94, %25 : vector<4x128xf32>
    %96 = math.tanh %95 : vector<4x128xf32>
    %cst_36 = arith.constant 5.000000e-01 : f32
    %97 = vector.broadcast %cst_36 : f32 to vector<4x128xf32>
    %98 = arith.mulf %97, %96 : vector<4x128xf32>
    %cst_37 = arith.constant 5.000000e-01 : f32
    %99 = vector.broadcast %cst_37 : f32 to vector<4x128xf32>
    %100 = arith.addf %98, %99 : vector<4x128xf32>
    %101 = arith.select %22, %96, %100 : vector<4x128xi1>, vector<4x128xf32>
    %102 = vector.extract_strided_slice %101 {offsets = [0, 0], sizes = [4, 32], strides = [1, 1]} : vector<4x128xf32> to vector<4x32xf32>
    %103 = vector.extract_strided_slice %101 {offsets = [0, 32], sizes = [4, 32], strides = [1, 1]} : vector<4x128xf32> to vector<4x32xf32>
    %104 = vector.extract_strided_slice %101 {offsets = [0, 64], sizes = [4, 32], strides = [1, 1]} : vector<4x128xf32> to vector<4x32xf32>
    %105 = vector.extract_strided_slice %101 {offsets = [0, 96], sizes = [4, 32], strides = [1, 1]} : vector<4x128xf32> to vector<4x32xf32>
    %106 = arith.mulf %103, %85 : vector<4x32xf32>
    %107 = arith.mulf %102, %104 : vector<4x32xf32>
    %108 = arith.addf %106, %107 : vector<4x32xf32>
    %109 = math.tanh %108 : vector<4x32xf32>
    %110 = arith.mulf %105, %109 : vector<4x32xf32>
    %111 = vector.extract_strided_slice %16 {offsets = [2, 0, 0], sizes = [1, 4, 32], strides = [1, 1, 1]} : vector<8x4x32xi1> to vector<1x4x32xi1>
    %112 = vector.shape_cast %111 : vector<1x4x32xi1> to vector<4x32xi1>
    %113 = arith.select %112, %110, %84 : vector<4x32xi1>, vector<4x32xf32>
    %114 = arith.select %112, %108, %85 : vector<4x32xi1>, vector<4x32xf32>
    %115 = vector.extract_strided_slice %9 {offsets = [3, 0, 0], sizes = [1, 4, 8], strides = [1, 1, 1]} : vector<8x4x8xf32> to vector<1x4x8xf32>
    %116 = vector.shape_cast %115 : vector<1x4x8xf32> to vector<4x8xf32>
    %117 = arith.truncf %116 : vector<4x8xf32> to vector<4x8xbf16>
    %cst_38 = arith.constant dense<0.000000e+00> : vector<4x128xf32>
    %118 = tpu.matmul %117, %0, %cst_38 {dimension_numbers = #tpu.dot_dimension_numbers<[1], [0], [0], [1], [0, 0, 1, 1], [], []>} : vector<4x8xbf16>, vector<8x128xbf16>, vector<4x128xf32> -> vector<4x128xf32>
    %119 = vector.broadcast %2 : vector<1x128xf32> to vector<4x128xf32>
    %120 = arith.addf %118, %119 : vector<4x128xf32>
    %121 = arith.truncf %113 : vector<4x32xf32> to vector<4x32xbf16>
    %cst_39 = arith.constant dense<0.000000e+00> : vector<4x128xf32>
    %122 = tpu.matmul %121, %1, %cst_39 {dimension_numbers = #tpu.dot_dimension_numbers<[1], [0], [0], [1], [0, 0, 1, 1], [], []>} : vector<4x32xbf16>, vector<32x128xbf16>, vector<4x128xf32> -> vector<4x128xf32>
    %123 = arith.addf %120, %122 : vector<4x128xf32>
    %124 = arith.mulf %123, %25 : vector<4x128xf32>
    %125 = math.tanh %124 : vector<4x128xf32>
    %cst_40 = arith.constant 5.000000e-01 : f32
    %126 = vector.broadcast %cst_40 : f32 to vector<4x128xf32>
    %127 = arith.mulf %126, %125 : vector<4x128xf32>
    %cst_41 = arith.constant 5.000000e-01 : f32
    %128 = vector.broadcast %cst_41 : f32 to vector<4x128xf32>
    %129 = arith.addf %127, %128 : vector<4x128xf32>
    %130 = arith.select %22, %125, %129 : vector<4x128xi1>, vector<4x128xf32>
    %131 = vector.extract_strided_slice %130 {offsets = [0, 0], sizes = [4, 32], strides = [1, 1]} : vector<4x128xf32> to vector<4x32xf32>
    %132 = vector.extract_strided_slice %130 {offsets = [0, 32], sizes = [4, 32], strides = [1, 1]} : vector<4x128xf32> to vector<4x32xf32>
    %133 = vector.extract_strided_slice %130 {offsets = [0, 64], sizes = [4, 32], strides = [1, 1]} : vector<4x128xf32> to vector<4x32xf32>
    %134 = vector.extract_strided_slice %130 {offsets = [0, 96], sizes = [4, 32], strides = [1, 1]} : vector<4x128xf32> to vector<4x32xf32>
    %135 = arith.mulf %132, %114 : vector<4x32xf32>
    %136 = arith.mulf %131, %133 : vector<4x32xf32>
    %137 = arith.addf %135, %136 : vector<4x32xf32>
    %138 = math.tanh %137 : vector<4x32xf32>
    %139 = arith.mulf %134, %138 : vector<4x32xf32>
    %140 = vector.extract_strided_slice %16 {offsets = [3, 0, 0], sizes = [1, 4, 32], strides = [1, 1, 1]} : vector<8x4x32xi1> to vector<1x4x32xi1>
    %141 = vector.shape_cast %140 : vector<1x4x32xi1> to vector<4x32xi1>
    %142 = arith.select %141, %139, %113 : vector<4x32xi1>, vector<4x32xf32>
    %143 = arith.select %141, %137, %114 : vector<4x32xi1>, vector<4x32xf32>
    %144 = vector.extract_strided_slice %9 {offsets = [4, 0, 0], sizes = [1, 4, 8], strides = [1, 1, 1]} : vector<8x4x8xf32> to vector<1x4x8xf32>
    %145 = vector.shape_cast %144 : vector<1x4x8xf32> to vector<4x8xf32>
    %146 = arith.truncf %145 : vector<4x8xf32> to vector<4x8xbf16>
    %cst_42 = arith.constant dense<0.000000e+00> : vector<4x128xf32>
    %147 = tpu.matmul %146, %0, %cst_42 {dimension_numbers = #tpu.dot_dimension_numbers<[1], [0], [0], [1], [0, 0, 1, 1], [], []>} : vector<4x8xbf16>, vector<8x128xbf16>, vector<4x128xf32> -> vector<4x128xf32>
    %148 = vector.broadcast %2 : vector<1x128xf32> to vector<4x128xf32>
    %149 = arith.addf %147, %148 : vector<4x128xf32>
    %150 = arith.truncf %142 : vector<4x32xf32> to vector<4x32xbf16>
    %cst_43 = arith.constant dense<0.000000e+00> : vector<4x128xf32>
    %151 = tpu.matmul %150, %1, %cst_43 {dimension_numbers = #tpu.dot_dimension_numbers<[1], [0], [0], [1], [0, 0, 1, 1], [], []>} : vector<4x32xbf16>, vector<32x128xbf16>, vector<4x128xf32> -> vector<4x128xf32>
    %152 = arith.addf %149, %151 : vector<4x128xf32>
    %153 = arith.mulf %152, %25 : vector<4x128xf32>
    %154 = math.tanh %153 : vector<4x128xf32>
    %cst_44 = arith.constant 5.000000e-01 : f32
    %155 = vector.broadcast %cst_44 : f32 to vector<4x128xf32>
    %156 = arith.mulf %155, %154 : vector<4x128xf32>
    %cst_45 = arith.constant 5.000000e-01 : f32
    %157 = vector.broadcast %cst_45 : f32 to vector<4x128xf32>
    %158 = arith.addf %156, %157 : vector<4x128xf32>
    %159 = arith.select %22, %154, %158 : vector<4x128xi1>, vector<4x128xf32>
    %160 = vector.extract_strided_slice %159 {offsets = [0, 0], sizes = [4, 32], strides = [1, 1]} : vector<4x128xf32> to vector<4x32xf32>
    %161 = vector.extract_strided_slice %159 {offsets = [0, 32], sizes = [4, 32], strides = [1, 1]} : vector<4x128xf32> to vector<4x32xf32>
    %162 = vector.extract_strided_slice %159 {offsets = [0, 64], sizes = [4, 32], strides = [1, 1]} : vector<4x128xf32> to vector<4x32xf32>
    %163 = vector.extract_strided_slice %159 {offsets = [0, 96], sizes = [4, 32], strides = [1, 1]} : vector<4x128xf32> to vector<4x32xf32>
    %164 = arith.mulf %161, %143 : vector<4x32xf32>
    %165 = arith.mulf %160, %162 : vector<4x32xf32>
    %166 = arith.addf %164, %165 : vector<4x32xf32>
    %167 = math.tanh %166 : vector<4x32xf32>
    %168 = arith.mulf %163, %167 : vector<4x32xf32>
    %169 = vector.extract_strided_slice %16 {offsets = [4, 0, 0], sizes = [1, 4, 32], strides = [1, 1, 1]} : vector<8x4x32xi1> to vector<1x4x32xi1>
    %170 = vector.shape_cast %169 : vector<1x4x32xi1> to vector<4x32xi1>
    %171 = arith.select %170, %168, %142 : vector<4x32xi1>, vector<4x32xf32>
    %172 = arith.select %170, %166, %143 : vector<4x32xi1>, vector<4x32xf32>
    %173 = vector.extract_strided_slice %9 {offsets = [5, 0, 0], sizes = [1, 4, 8], strides = [1, 1, 1]} : vector<8x4x8xf32> to vector<1x4x8xf32>
    %174 = vector.shape_cast %173 : vector<1x4x8xf32> to vector<4x8xf32>
    %175 = arith.truncf %174 : vector<4x8xf32> to vector<4x8xbf16>
    %cst_46 = arith.constant dense<0.000000e+00> : vector<4x128xf32>
    %176 = tpu.matmul %175, %0, %cst_46 {dimension_numbers = #tpu.dot_dimension_numbers<[1], [0], [0], [1], [0, 0, 1, 1], [], []>} : vector<4x8xbf16>, vector<8x128xbf16>, vector<4x128xf32> -> vector<4x128xf32>
    %177 = vector.broadcast %2 : vector<1x128xf32> to vector<4x128xf32>
    %178 = arith.addf %176, %177 : vector<4x128xf32>
    %179 = arith.truncf %171 : vector<4x32xf32> to vector<4x32xbf16>
    %cst_47 = arith.constant dense<0.000000e+00> : vector<4x128xf32>
    %180 = tpu.matmul %179, %1, %cst_47 {dimension_numbers = #tpu.dot_dimension_numbers<[1], [0], [0], [1], [0, 0, 1, 1], [], []>} : vector<4x32xbf16>, vector<32x128xbf16>, vector<4x128xf32> -> vector<4x128xf32>
    %181 = arith.addf %178, %180 : vector<4x128xf32>
    %182 = arith.mulf %181, %25 : vector<4x128xf32>
    %183 = math.tanh %182 : vector<4x128xf32>
    %cst_48 = arith.constant 5.000000e-01 : f32
    %184 = vector.broadcast %cst_48 : f32 to vector<4x128xf32>
    %185 = arith.mulf %184, %183 : vector<4x128xf32>
    %cst_49 = arith.constant 5.000000e-01 : f32
    %186 = vector.broadcast %cst_49 : f32 to vector<4x128xf32>
    %187 = arith.addf %185, %186 : vector<4x128xf32>
    %188 = arith.select %22, %183, %187 : vector<4x128xi1>, vector<4x128xf32>
    %189 = vector.extract_strided_slice %188 {offsets = [0, 0], sizes = [4, 32], strides = [1, 1]} : vector<4x128xf32> to vector<4x32xf32>
    %190 = vector.extract_strided_slice %188 {offsets = [0, 32], sizes = [4, 32], strides = [1, 1]} : vector<4x128xf32> to vector<4x32xf32>
    %191 = vector.extract_strided_slice %188 {offsets = [0, 64], sizes = [4, 32], strides = [1, 1]} : vector<4x128xf32> to vector<4x32xf32>
    %192 = vector.extract_strided_slice %188 {offsets = [0, 96], sizes = [4, 32], strides = [1, 1]} : vector<4x128xf32> to vector<4x32xf32>
    %193 = arith.mulf %190, %172 : vector<4x32xf32>
    %194 = arith.mulf %189, %191 : vector<4x32xf32>
    %195 = arith.addf %193, %194 : vector<4x32xf32>
    %196 = math.tanh %195 : vector<4x32xf32>
    %197 = arith.mulf %192, %196 : vector<4x32xf32>
    %198 = vector.extract_strided_slice %16 {offsets = [5, 0, 0], sizes = [1, 4, 32], strides = [1, 1, 1]} : vector<8x4x32xi1> to vector<1x4x32xi1>
    %199 = vector.shape_cast %198 : vector<1x4x32xi1> to vector<4x32xi1>
    %200 = arith.select %199, %197, %171 : vector<4x32xi1>, vector<4x32xf32>
    %201 = arith.select %199, %195, %172 : vector<4x32xi1>, vector<4x32xf32>
    %202 = vector.extract_strided_slice %9 {offsets = [6, 0, 0], sizes = [1, 4, 8], strides = [1, 1, 1]} : vector<8x4x8xf32> to vector<1x4x8xf32>
    %203 = vector.shape_cast %202 : vector<1x4x8xf32> to vector<4x8xf32>
    %204 = arith.truncf %203 : vector<4x8xf32> to vector<4x8xbf16>
    %cst_50 = arith.constant dense<0.000000e+00> : vector<4x128xf32>
    %205 = tpu.matmul %204, %0, %cst_50 {dimension_numbers = #tpu.dot_dimension_numbers<[1], [0], [0], [1], [0, 0, 1, 1], [], []>} : vector<4x8xbf16>, vector<8x128xbf16>, vector<4x128xf32> -> vector<4x128xf32>
    %206 = vector.broadcast %2 : vector<1x128xf32> to vector<4x128xf32>
    %207 = arith.addf %205, %206 : vector<4x128xf32>
    %208 = arith.truncf %200 : vector<4x32xf32> to vector<4x32xbf16>
    %cst_51 = arith.constant dense<0.000000e+00> : vector<4x128xf32>
    %209 = tpu.matmul %208, %1, %cst_51 {dimension_numbers = #tpu.dot_dimension_numbers<[1], [0], [0], [1], [0, 0, 1, 1], [], []>} : vector<4x32xbf16>, vector<32x128xbf16>, vector<4x128xf32> -> vector<4x128xf32>
    %210 = arith.addf %207, %209 : vector<4x128xf32>
    %211 = arith.mulf %210, %25 : vector<4x128xf32>
    %212 = math.tanh %211 : vector<4x128xf32>
    %cst_52 = arith.constant 5.000000e-01 : f32
    %213 = vector.broadcast %cst_52 : f32 to vector<4x128xf32>
    %214 = arith.mulf %213, %212 : vector<4x128xf32>
    %cst_53 = arith.constant 5.000000e-01 : f32
    %215 = vector.broadcast %cst_53 : f32 to vector<4x128xf32>
    %216 = arith.addf %214, %215 : vector<4x128xf32>
    %217 = arith.select %22, %212, %216 : vector<4x128xi1>, vector<4x128xf32>
    %218 = vector.extract_strided_slice %217 {offsets = [0, 0], sizes = [4, 32], strides = [1, 1]} : vector<4x128xf32> to vector<4x32xf32>
    %219 = vector.extract_strided_slice %217 {offsets = [0, 32], sizes = [4, 32], strides = [1, 1]} : vector<4x128xf32> to vector<4x32xf32>
    %220 = vector.extract_strided_slice %217 {offsets = [0, 64], sizes = [4, 32], strides = [1, 1]} : vector<4x128xf32> to vector<4x32xf32>
    %221 = vector.extract_strided_slice %217 {offsets = [0, 96], sizes = [4, 32], strides = [1, 1]} : vector<4x128xf32> to vector<4x32xf32>
    %222 = arith.mulf %219, %201 : vector<4x32xf32>
    %223 = arith.mulf %218, %220 : vector<4x32xf32>
    %224 = arith.addf %222, %223 : vector<4x32xf32>
    %225 = math.tanh %224 : vector<4x32xf32>
    %226 = arith.mulf %221, %225 : vector<4x32xf32>
    %227 = vector.extract_strided_slice %16 {offsets = [6, 0, 0], sizes = [1, 4, 32], strides = [1, 1, 1]} : vector<8x4x32xi1> to vector<1x4x32xi1>
    %228 = vector.shape_cast %227 : vector<1x4x32xi1> to vector<4x32xi1>
    %229 = arith.select %228, %226, %200 : vector<4x32xi1>, vector<4x32xf32>
    %230 = arith.select %228, %224, %201 : vector<4x32xi1>, vector<4x32xf32>
    %231 = vector.extract_strided_slice %9 {offsets = [7, 0, 0], sizes = [1, 4, 8], strides = [1, 1, 1]} : vector<8x4x8xf32> to vector<1x4x8xf32>
    %232 = vector.shape_cast %231 : vector<1x4x8xf32> to vector<4x8xf32>
    %233 = arith.truncf %232 : vector<4x8xf32> to vector<4x8xbf16>
    %cst_54 = arith.constant dense<0.000000e+00> : vector<4x128xf32>
    %234 = tpu.matmul %233, %0, %cst_54 {dimension_numbers = #tpu.dot_dimension_numbers<[1], [0], [0], [1], [0, 0, 1, 1], [], []>} : vector<4x8xbf16>, vector<8x128xbf16>, vector<4x128xf32> -> vector<4x128xf32>
    %235 = vector.broadcast %2 : vector<1x128xf32> to vector<4x128xf32>
    %236 = arith.addf %234, %235 : vector<4x128xf32>
    %237 = arith.truncf %229 : vector<4x32xf32> to vector<4x32xbf16>
    %cst_55 = arith.constant dense<0.000000e+00> : vector<4x128xf32>
    %238 = tpu.matmul %237, %1, %cst_55 {dimension_numbers = #tpu.dot_dimension_numbers<[1], [0], [0], [1], [0, 0, 1, 1], [], []>} : vector<4x32xbf16>, vector<32x128xbf16>, vector<4x128xf32> -> vector<4x128xf32>
    %239 = arith.addf %236, %238 : vector<4x128xf32>
    %240 = arith.mulf %239, %25 : vector<4x128xf32>
    %241 = math.tanh %240 : vector<4x128xf32>
    %cst_56 = arith.constant 5.000000e-01 : f32
    %242 = vector.broadcast %cst_56 : f32 to vector<4x128xf32>
    %243 = arith.mulf %242, %241 : vector<4x128xf32>
    %cst_57 = arith.constant 5.000000e-01 : f32
    %244 = vector.broadcast %cst_57 : f32 to vector<4x128xf32>
    %245 = arith.addf %243, %244 : vector<4x128xf32>
    %246 = arith.select %22, %241, %245 : vector<4x128xi1>, vector<4x128xf32>
    %247 = vector.extract_strided_slice %246 {offsets = [0, 0], sizes = [4, 32], strides = [1, 1]} : vector<4x128xf32> to vector<4x32xf32>
    %248 = vector.extract_strided_slice %246 {offsets = [0, 32], sizes = [4, 32], strides = [1, 1]} : vector<4x128xf32> to vector<4x32xf32>
    %249 = vector.extract_strided_slice %246 {offsets = [0, 64], sizes = [4, 32], strides = [1, 1]} : vector<4x128xf32> to vector<4x32xf32>
    %250 = vector.extract_strided_slice %246 {offsets = [0, 96], sizes = [4, 32], strides = [1, 1]} : vector<4x128xf32> to vector<4x32xf32>
    %251 = arith.mulf %248, %230 : vector<4x32xf32>
    %252 = arith.mulf %247, %249 : vector<4x32xf32>
    %253 = arith.addf %251, %252 : vector<4x32xf32>
    %254 = math.tanh %253 : vector<4x32xf32>
    %255 = arith.mulf %250, %254 : vector<4x32xf32>
    %256 = vector.extract_strided_slice %16 {offsets = [7, 0, 0], sizes = [1, 4, 32], strides = [1, 1, 1]} : vector<8x4x32xi1> to vector<1x4x32xi1>
    %257 = vector.shape_cast %256 : vector<1x4x32xi1> to vector<4x32xi1>
    %258 = arith.select %257, %255, %229 : vector<4x32xi1>, vector<4x32xf32>
    %259 = arith.truncf %258 : vector<4x32xf32> to vector<4x32xbf16>
    %cst_58 = arith.constant dense<0.000000e+00> : vector<4x32xf32>
    %260 = tpu.matmul %259, %3, %cst_58 {dimension_numbers = #tpu.dot_dimension_numbers<[1], [0], [0], [1], [0, 0, 1, 1], [], []>} : vector<4x32xbf16>, vector<32x32xbf16>, vector<4x32xf32> -> vector<4x32xf32>
    %261 = vector.broadcast %4 : vector<1x32xf32> to vector<4x32xf32>
    %262 = arith.addf %260, %261 : vector<4x32xf32>
    %cst_59 = arith.constant 0.000000e+00 : f32
    %263 = vector.broadcast %cst_59 : f32 to vector<4x32xf32>
    %264 = arith.maximumf %262, %263 : vector<4x32xf32>
    %265 = vector.broadcast %5 : vector<1x32xf32> to vector<4x32xf32>
    %266 = arith.mulf %264, %265 : vector<4x32xf32>
    %cst_60 = arith.constant dense<0.000000e+00> : vector<4xf32>
    %267 = vector.multi_reduction <add>, %266, %cst_60 [1] : vector<4x32xf32> to vector<4xf32>
    %268 = vector.shape_cast %267 : vector<4xf32> to vector<4x1xf32>
    %269 = vector.broadcast %6 : vector<1x1xf32> to vector<4x1xf32>
    %270 = arith.addf %268, %269 : vector<4x1xf32>
    %271 = vector.extract_strided_slice %270 {offsets = [0, 0], sizes = [2, 1], strides = [1, 1]} : vector<4x1xf32> to vector<2x1xf32>
    %272 = vector.extract_strided_slice %270 {offsets = [2, 0], sizes = [2, 1], strides = [1, 1]} : vector<4x1xf32> to vector<2x1xf32>
    %c0_61 = arith.constant 0 : index
    %c0_62 = arith.constant 0 : index
    %273 = vector.load %arg4[%c0_61, %c0_62] : memref<2x1xf32, #tpu.memory_space<vmem>>, vector<2x1xf32>
    %274 = arith.subf %271, %272 : vector<2x1xf32>
    %cst_63 = arith.constant 0.000000e+00 : f32
    %275 = vector.broadcast %cst_63 : f32 to vector<2x1xf32>
    %276 = arith.subf %275, %273 : vector<2x1xf32>
    %277 = arith.mulf %276, %274 : vector<2x1xf32>
    %cst_64 = arith.constant 0.000000e+00 : f32
    %278 = vector.broadcast %cst_64 : f32 to vector<2x1xf32>
    %279 = arith.maximumf %274, %278 : vector<2x1xf32>
    %280 = math.absf %274 : vector<2x1xf32>
    %cst_65 = arith.constant 0.000000e+00 : f32
    %281 = vector.broadcast %cst_65 : f32 to vector<2x1xf32>
    %282 = arith.subf %281, %280 : vector<2x1xf32>
    %283 = math.exp %282 : vector<2x1xf32>
    %284 = math.log1p %283 : vector<2x1xf32>
    %285 = arith.addf %279, %284 : vector<2x1xf32>
    %286 = arith.addf %277, %285 : vector<2x1xf32>
    %287 = vector.shape_cast %286 : vector<2x1xf32> to vector<1x2x1xf32>
    %cst_66 = arith.constant dense<0.000000e+00> : vector<1xf32>
    %288 = vector.multi_reduction <add>, %287, %cst_66 [1, 2] : vector<1x2x1xf32> to vector<1xf32>
    %289 = vector.shape_cast %288 : vector<1xf32> to vector<1x1x1xf32>
    %290 = vector.extract %289[0, 0, 0] : f32 from vector<1x1x1xf32>
    %cst_67 = arith.constant 2.000000e+00 : f32
    %291 = arith.divf %290, %cst_67 : f32
    %292 = vector.broadcast %291 : f32 to vector<1x1xf32>
    %cst_68 = arith.constant 0.000000e+00 : f32
    %293 = vector.broadcast %cst_68 : f32 to vector<3x1xf32>
    %294 = tpu.concatenate %270, %292, %293 in 0 : vector<4x1xf32>, vector<1x1xf32>, vector<3x1xf32> -> vector<8x1xf32>
    %295 = tpu.iota {dimensions = array<i32: 1>} : vector<8x128xi32>
    %c0_i32 = arith.constant 0 : i32
    %296 = vector.broadcast %c0_i32 : i32 to vector<8x128xi32>
    %297 = arith.cmpi eq, %295, %296 : vector<8x128xi32>
    %cst_69 = arith.constant 0.000000e+00 : f32
    %298 = vector.shape_cast %294 : vector<8x1xf32> to vector<8x1xf32>
    %299 = vector.broadcast %298 : vector<8x1xf32> to vector<8x128xf32>
    %300 = vector.broadcast %cst_69 : f32 to vector<8x128xf32>
    %301 = arith.select %297, %299, %300 : vector<8x128xi1>, vector<8x128xf32>
    %c0_70 = arith.constant 0 : index
    %c0_71 = arith.constant 0 : index
    %302 = vector.load %arg12[%c0_70, %c0_71] : memref<8x128xf32, #tpu.memory_space<vmem>>, vector<8x128xf32>
    tpu.vector_store %arg12[%c0_70, %c0_71], %301 {strides = array<i32>} : memref<8x128xf32, #tpu.memory_space<vmem>>, vector<8x128xf32>,
    return
  }
}

</mosaic_0001>

<bundles_post_ra>
// kernel: main_model_forward.1
= control target key start
LH: loop header
LB: loop body
LE: loop exit
PB: predicated region body
PF: predicated region fallthrough
CT: control target
= control target key end

     0   :  { %s2008_s0 = inlined_call_operand.hbm [shape: f32[8,2,8], index: 0, kind: input, shape index: {}]   ;;  %s2009_s1 = inlined_call_operand.vmem [shape: f32[8,2,8], index: 1, kind: input, shape index: {}]   ;;  %s2010_s2 = inlined_call_operand.vmem [shape: s32[2,1], index: 2, kind: input, shape index: {}]   ;;  %s2011_s3 = inlined_call_operand.vmem [shape: s32[2,1], index: 3, kind: input, shape index: {}]   ;;  %s2012_s4 = inlined_call_operand.vmem [shape: f32[2,1], index: 4, kind: input, shape index: {}]   ;;  %s2013_s5 = inlined_call_operand.vmem [shape: bf16[8,128], index: 5, kind: input, shape index: {}]   ;;  %s2014_s6 = inlined_call_operand.vmem [shape: bf16[32,128], index: 6, kind: input, shape index: {}]   ;;  %s2015_s7 = inlined_call_operand.vmem [shape: f32[1,128], index: 7, kind: input, shape index: {}]   ;;  %s2016_s8 = inlined_call_operand.hbm [shape: bf16[32,32], index: 8, kind: input, shape index: {}]   ;;  %s2017_s9 = inlined_call_operand.hbm [shape: f32[1,32], index: 9, kind: input, shape index: {}]   ;;  %s2018_s10 = inlined_call_operand.vmem [shape: f32[1,32], index: 10, kind: input, shape index: {}]   ;;  %s2019_s11 = inlined_call_operand.<no memory space> [shape: f32[1,1], index: 11, kind: input, shape index: {}]   ;;  %s2020_s12 = inlined_call_operand.vmem [shape: f32[8,128], index: 12, kind: output, shape index: {}]  }
   0x1   :  { %v17_v0 = vstv %s2019_s11 }
   0x2   :  { %18 = vst [vmem:[#allocation2] sm:$0x1] %v17_v0 }
   0x3   :  { %19 = vsyncpa [#allocation4], 0 }
   0x4   :  { %20 = vsyncpa [#allocation6], 0  ;;  %s1604_s23 = smov [#allocation5]   ;;  %s1534_s27 = scalar_lea.hbm %s2016_s8, 256 }
   0x5   :  { %s52_s24 = sshll.u32 %s1604_s23, 4  ;;  %p1535_p0 = scmp.ne.s32.totalorder %s2016_s8, %s1534_s27  ;;  %s53_s24 = int_to_ptr.vmem [resolvable:$true] %s52_s24 }
   0x6   :  { %p1538_p1 = scmp.lt.u32.totalorder %s1534_s27, %s2016_s8 }
   0x8   :  { %p1540_p2 = pnand %p1538_p1, %p1535_p0 }
   0xa   :  { %1543 = shalt.err (!%p1540_p2)
}
   0xb   :  { %s1544_s11 = scalar_lea.vmem %s53_s24, 256  ;;  %p1549_p4 = scmp.lt.s32.totalorder %s53_s24, %s53_s24 }
   0xc   :  { %p1545_p3 = scmp.ne.s32.totalorder %s53_s24, %s1544_s11  ;;  %p1550_p5 = scmp.lt.s32.totalorder %s1544_s11, %s1544_s11 }
   0xe   :  { %p1551_p6 = por %p1550_p5, %p1549_p4 }
  0x10   :  { %p1552_p7 = pnand %p1551_p6, %p1545_p3 }
  0x12   :  { %1555 = shalt.err (!%p1552_p7)
}
  0x13   :  { %s1605_s14 = smov 64   ;;  %s1606_s15 = smov 4  }
  0x14   :  { %58 = dma.hbm_to_vmem [thread:$0]  %s2016_s8, 256, %s53_s24, [#allocation6], %s1605_s14, %s1605_s14, %s1606_s15  }
  0x15   :  { %s1607_s18 = smov [#allocation3]   ;;  %s1556_s22 = scalar_lea.hbm %s2008_s0, 256 }
  0x16   :  { %s26_s19 = sshll.u32 %s1607_s18, 4  ;;  %p1557_p8 = scmp.ne.s32.totalorder %s2008_s0, %s1556_s22  ;;  %s27_s19 = int_to_ptr.vmem [resolvable:$true] %s26_s19 }
  0x17   :  { %p1560_p9 = scmp.lt.u32.totalorder %s1556_s22, %s2008_s0 }
  0x19   :  { %p1562_p10 = pnand %p1560_p9, %p1557_p8 }
  0x1b   :  { %1565 = shalt.err (!%p1562_p10)
}
  0x1c   :  { %s1566_s28 = scalar_lea.vmem %s27_s19, 256  ;;  %p1571_p12 = scmp.lt.s32.totalorder %s27_s19, %s27_s19 }
  0x1d   :  { %p1567_p11 = scmp.ne.s32.totalorder %s27_s19, %s1566_s28  ;;  %p1572_p13 = scmp.lt.s32.totalorder %s1566_s28, %s1566_s28 }
  0x1f   :  { %p1573_p0 = por %p1572_p13, %p1571_p12 }
  0x21   :  { %p1574_p1 = pnand %p1573_p0, %p1567_p11 }
  0x23   :  { %1577 = shalt.err (!%p1574_p1)
}
  0x24   :  { %s1608_s8 = smov 32   ;;  %s1609_s24 = smov 2  }
  0x25   :  { %32 = dma.hbm_to_vmem [thread:$0]  %s2008_s0, 256, %s27_s19, [#allocation4], %s1608_s8, %s1608_s8, %s1609_s24  }
  0x26   :  { %s1610_s13 = smov [#allocation7]   ;;  %s1578_s17 = scalar_lea.hbm %s2017_s9, 16 }
  0x27   :  { %s65_s11 = sshll.u32 %s1610_s13, 4  ;;  %p1579_p2 = scmp.ne.s32.totalorder %s2017_s9, %s1578_s17  ;;  %s66_s11 = int_to_ptr.vmem [resolvable:$true] %s65_s11 }
  0x28   :  { %p1582_p3 = scmp.lt.u32.totalorder %s1578_s17, %s2017_s9 }
  0x2a   :  { %p1584_p4 = pnand %p1582_p3, %p1579_p2 }
  0x2c   :  { %1587 = shalt.err (!%p1584_p4)
}
  0x2d   :  { %s1588_s23 = scalar_lea.vmem %s66_s11, 16  ;;  %s1592_s0 = scalar_lea.vmem %s66_s11, 32 }
  0x2e   :  { %p1589_p5 = scmp.ne.s32.totalorder %s66_s11, %s1588_s23  ;;  %p1593_p6 = scmp.lt.s32.totalorder %s66_s11, %s66_s11 }
  0x2f   :  { %p1594_p7 = scmp.lt.s32.totalorder %s1592_s0, %s1588_s23 }
  0x31   :  { %p1595_p8 = por %p1594_p7, %p1593_p6 }
  0x33   :  { %p1596_p9 = pnand %p1595_p8, %p1589_p5 }
  0x35   :  { %1599 = shalt.err (!%p1596_p9)
}
  0x36   :  { %68 = dma.hbm_to_vmem [thread:$0]  %s2017_s9, 16, %s66_s11, [#allocation6]  }
  0x37   :  { %1600 = dma.done.wait [#allocation4], 256  }
  0x38   :  { %1601 = vsyncadd [#allocation4], 4294967040 }
  0x39   :  { %1602 = dma.done.wait [#allocation6], 272  }
  0x3a   :  { %1603 = vsyncadd [#allocation6], 4294967024  ;;  %v1611_v1 = vmov 0.0   ;;  %vm1612_vm0 = vmmov 0   ;;  %v1613_v2 = vmov 0   ;;  %vm177_vm1 = vcmask 1043456  }
  0x3b   :  { %1319 = vmatprep.subr.bf16.mxu0 %v1611_v1  ;;  %1321 = vmatprep.mubr.msk.bf16.mxu0 %vm1612_vm0, %v1611_v1  ;;  %vm136_vm2 = vcmask 1041408   ;;  %v83_v3 = vld [vmem:[%s2013_s5] sm:$0xf]  ;;  %vm173_vm3 = vcmask 64512   ;;  %v1753_v11 = vld [vmem:[%s2014_s6 + $0x8] sm:$0xff]   ;;  %v160_v16 = vlaneseq  ;;  %v1614_v20 = vmov 0.5  }
  0x3c   :  { %1492 = vset.pattern.permute.xlu1 %v1613_v2  ;;  %1333 = vmatprep.subr.bf16.mxu1 %v1611_v1  ;;  %v96_v4 = vld [vmem:[#allocation3] sm:$0x3]  ;;  %v1736_v6 = vsel %vm177_vm1, %v83_v3, 0  ;;  %v1782_v19 = vld [vmem:[%s2015_s7] ss:$0 sm:$0xff]  ;;  %vm233_vm8 = vcmask 261120  }
  0x3d   :  { %1335 = vmatprep.mubr.msk.bf16.mxu1 %vm1612_vm0, %v1611_v1  ;;  %1493 = vset.pattern.permute.xlu0 %v1613_v2  ;;  %v104_v5 = vld [vmem:[%s2009_s1] sm:$0x3]  ;;  %v1771_v17 = vand.u32 127, %v160_v16  ;;  %v97_v37 = vld [vmem:[#allocation3 + $0x2] sm:$0x3] }
  0x3e   :  { %v120_v7 = vrot.slane %v104_v5, 6  ;;  %1320 = vmatpush3.bf16.msra.mxu0 %v1736_v6  ;;  %1334 = vmatpush3.bf16.msra.mxu1 %v1736_v6  ;;  %v1745_v9 = vld [vmem:[%s2014_s6] sm:$0xff]  }
  0x3f   :  { %1325 = vmatprep.subr.bf16.mxu0 %v1611_v1  ;;  %1339 = vmatprep.subr.bf16.mxu1 %v1611_v1  ;;  %v145_v12 = vld [vmem:[%s2010_s2] sm:$0x3]  ;;  %vm162_vm4 = vcmp.ge.s32.totalorder %v1771_v17, 64  ;;  %vm163_vm5 = vcmp.lt.s32.totalorder %v1771_v17, 96  ;;  %v105_v38 = vld [vmem:[%s2009_s1 + $0x2] sm:$0x3] }
  0x40   :  { %v137_v8 = vsel %vm136_vm2, %v96_v4, %v120_v7  ;;  %v146_v13 = vld [vmem:[%s2011_s3] sm:$0x3]  ;;  %vm1775_vm6 = vmand %vm162_vm4, %vm163_vm5  ;;  %v121_v39 = vrot.slane %v105_v38, 6  ;;  %v106_v3 = vld [vmem:[%s2009_s1 + $0x4] sm:$0x3]  ;;  %vm1236_vm4 = vcmask 1044480  }
  0x41   :  { %v166_v10 = vpack.c.bf16 %v137_v8, %v137_v8  ;;  %v147_v14 = vrot.slane %v146_v13, 6  ;;  %v1786_v21 = vsel %vm1775_vm6, 1.0, %v1614_v20  ;;  %v122_v4 = vrot.slane %v106_v3, 6 }
  0x42   :  { %v138_v40 = vsel %vm136_vm2, %v97_v37, %v121_v39  ;;  %v107_v37 = vld [vmem:[%s2009_s1 + $0x6] sm:$0x3]  ;;  %vm1238_vm5 = vcmp.eq.s32.totalorder %v1771_v17, 0 }
  0x43   :  { %1322 = vmatmul.mubr.msk.bf16.vlgmr.msra.gmra.mrb[0].mxu0 %vm173_vm3, %v166_v10  ;;  %v148_v15 = vsel %vm136_vm2, %v145_v12, %v147_v14  ;;  %v302_v41 = vpack.c.bf16 %v138_v40, %v138_v40  ;;  %v123_v38 = vrot.slane %v107_v37, 6 }
  0x44   :  { %1326 = vmatpush3.bf16.msra.mxu0 %v1745_v9  ;;  %1329 = vmatprep.mubr.msk.bf16.mxu0 %vm1612_vm0, %v1611_v1 }
  0x45   :  { %1327 = vmatprep.subr.bf16.mxu0 %v1611_v1  ;;  %150 = vperm.xlu1 %1492, %v148_v15  }
  0x46   :  { %1336 = vmatmul.mubr.msk.bf16.vlgmr.msra.gmra.mrb[0].mxu1 %vm173_vm3, %v302_v41 }
  0x47   :  { %1340 = vmatpush3.bf16.msra.mxu1 %v1745_v9  ;;  %1343 = vmatprep.mubr.msk.bf16.mxu1 %vm1612_vm0, %v1611_v1 }
  0x48   :  { %1328 = vmatpush3.bf16.msra.mxu0 %v1753_v11  ;;  %1341 = vmatprep.subr.bf16.mxu1 %v1611_v1 }
  0x49   :  { %1347 = vmatprep.subr.bf16.mxu0 %v1611_v1 }
  0x4b   :  { %1342 = vmatpush3.bf16.msra.mxu1 %v1753_v11 }
  0x4c   :  { %1361 = vmatprep.subr.bf16.mxu1 %v1611_v1 }
  0x4f   :  { %1330 = vmatmul.mubr.bf16.vlgmr.msra.gmra.mrb[0].mxu0 %v1613_v2  ;;  %v98_v2 = vld [vmem:[#allocation3 + $0x4] sm:$0x3] }
  0x50   :  { %1348 = vmatpush3.bf16.msra.mxu0 %v1736_v6  ;;  %1349 = vmatprep.mubr.msk.bf16.mxu0 %vm1612_vm0, %v1611_v1  ;;  %v139_v5 = vsel %vm136_vm2, %v98_v2, %v122_v4  ;;  %v108_v2 = vld [vmem:[%s2009_s1 + $0x8] sm:$0x3] }
  0x51   :  { %1353 = vmatprep.subr.bf16.mxu0 %v1611_v1  ;;  %v418_v7 = vpack.c.bf16 %v139_v5, %v139_v5  ;;  %v124_v3 = vrot.slane %v108_v2, 6 }
  0x57   :  { %1350 = vmatmul.mubr.msk.bf16.vlgmr.msra.gmra.mrb[4].mxu0 %vm173_vm3, %v418_v7 }
  0x58   :  { %1354 = vmatpush3.bf16.msra.mxu0 %v1745_v9  ;;  %1357 = vmatprep.mubr.msk.bf16.mxu0 %vm1612_vm0, %v1611_v1 }
  0x59   :  { %1355 = vmatprep.subr.bf16.mxu0 %v1611_v1 }
  0x5c   :  { %1356 = vmatpush3.bf16.msra.mxu0 %v1753_v11 }
  0x5d   :  { %1375 = vmatprep.subr.bf16.mxu0 %v1611_v1 }
  0xc4   :  { %v1806_v43 = vpop.permute.xlu1 %150 }
  0xc5   :  { %vm152_vm7 = vcmp.gt.s32.totalorder %v1806_v43, 0  ;;  %vm153_vm9 = vcmp.gt.s32.totalorder %v1806_v43, 1  ;;  %vm154_vm10 = vcmp.gt.s32.totalorder %v1806_v43, 2  ;;  %vm155_vm11 = vcmp.gt.s32.totalorder %v1806_v43, 3 }
  0xc6   :  { %vm156_vm12 = vcmp.gt.s32.totalorder %v1806_v43, 4  ;;  %vm157_vm13 = vcmp.gt.s32.totalorder %v1806_v43, 5  ;;  %vm158_vm14 = vcmp.gt.s32.totalorder %v1806_v43, 6  ;;  %vm159_vm15 = vcmp.gt.s32.totalorder %v1806_v43, 7 }
 0x122   :  { %v271_v22 = vpop.f32.mrb[0].mxu0 }
 0x123   :  { %v1439_v23 = vadd.f32 %v1782_v19, %v271_v22  ;;  %v1331_v24 = vpop.f32.mrb[1].mxu0 }
 0x124   :  { %v274_v25 = vpop.f32.mrb[2].mxu0 }
 0x125   :  { %v278_v26 = vmul.f32 %v1439_v23, %v1786_v21  ;;  %v1332_v27 = vpop.f32.mrb[3].mxu0 }
 0x127   :  { %1498 = vtanh.f32 %v278_v26 }
 0x131   :  { %v1499_v28 = vpop.eup %1498 }
 0x132   :  { %v280_v29 = vmul.f32 0.5, %v1499_v28 }
 0x134   :  { %v281_v30 = vadd.f32 0.5, %v280_v29 }
 0x136   :  { %v282_v31 = vsel %vm1775_vm6, %v1499_v28, %v281_v30 }
 0x137   :  { %285 = vrot.lane.b32.xlu0 %v282_v31, %s1605_s14  ;;  %v283_v34 = vmul.f32 0.0, %v282_v31 }
 0x1a9   :  { %v286_v32 = vpop.permute.xlu0 %285 }
 0x1aa   :  { %v288_v33 = vmul.f32 %v286_v32, %v282_v31 }
 0x1ac   :  { %290 = vrot.lane.b32.xlu0 %v288_v33, %s1608_s8 }
 0x21e   :  { %v291_v35 = vpop.permute.xlu0 %290 }
 0x21f   :  { %v293_v36 = vadd.f32 %v291_v35, %v283_v34 }
 0x221   :  { %1500 = vtanh.f32 %v293_v36  ;;  %v301_v61 = vsel %vm152_vm7, %v293_v36, 0.0  ;;  %v99_v36 = vld [vmem:[#allocation3 + $0x6] sm:$0x3] }
 0x222   :  { %v140_v39 = vsel %vm136_vm2, %v99_v36, %v123_v38  ;;  %v109_v36 = vld [vmem:[%s2009_s1 + $0xa] sm:$0x3] }
 0x223   :  { %v534_v40 = vpack.c.bf16 %v140_v39, %v140_v39  ;;  %v125_v37 = vrot.slane %v109_v36, 6 }
 0x22b   :  { %v1501_v42 = vpop.eup %1500 }
 0x22c   :  { %296 = vrot.lane.b32.xlu1 %v1501_v42, %s1605_s14 }
 0x29e   :  { %v297_v44 = vpop.permute.xlu1 %296 }
 0x29f   :  { %v299_v45 = vmul.f32 %v297_v44, %v282_v31 }
 0x2a1   :  { %v300_v46 = vsel %vm152_vm7, %v299_v45, 0.0 }
 0x2a2   :  { %v346_v47 = vpack.c.bf16 %v300_v46, %v300_v46 }
 0x2a4   :  { %348 = vrot.lane.b32.xlu0 %v346_v47, %s1608_s8 }
 0x316   :  { %v349_v48 = vpop.permute.xlu0 %348 }
 0x317   :  { %1344 = vmatmul.mubr.msk.bf16.vlgmr.msra.gmra.mrb[0].mxu1 %vm233_vm8, %v349_v48 }
 0x318   :  { %1362 = vmatpush3.bf16.msra.mxu1 %v1736_v6  ;;  %1363 = vmatprep.mubr.msk.bf16.mxu1 %vm1612_vm0, %v1611_v1 }
 0x319   :  { %1367 = vmatprep.subr.bf16.mxu1 %v1611_v1 }
 0x31f   :  { %1364 = vmatmul.mubr.msk.bf16.vlgmr.msra.gmra.mrb[4].mxu1 %vm173_vm3, %v534_v40 }
 0x320   :  { %1368 = vmatpush3.bf16.msra.mxu1 %v1745_v9  ;;  %1371 = vmatprep.mubr.msk.bf16.mxu1 %vm1612_vm0, %v1611_v1 }
 0x321   :  { %1369 = vmatprep.subr.bf16.mxu1 %v1611_v1 }
 0x324   :  { %1370 = vmatpush3.bf16.msra.mxu1 %v1753_v11 }
 0x325   :  { %1389 = vmatprep.subr.bf16.mxu1 %v1611_v1 }
 0x3ea   :  { %v387_v49 = vpop.f32.mrb[0].mxu1 }
 0x3eb   :  { %v1440_v50 = vadd.f32 %v1782_v19, %v387_v49  ;;  %v1345_v51 = vpop.f32.mrb[1].mxu1 }
 0x3ec   :  { %v390_v52 = vpop.f32.mrb[2].mxu1 }
 0x3ed   :  { %v394_v53 = vmul.f32 %v1440_v50, %v1786_v21  ;;  %v1346_v54 = vpop.f32.mrb[3].mxu1 }
 0x3ef   :  { %1502 = vtanh.f32 %v394_v53 }
 0x3f9   :  { %v1503_v55 = vpop.eup %1502 }
 0x3fa   :  { %v396_v56 = vmul.f32 0.5, %v1503_v55 }
 0x3fc   :  { %v397_v57 = vadd.f32 0.5, %v396_v56 }
 0x3fe   :  { %v398_v58 = vsel %vm1775_vm6, %v1503_v55, %v397_v57 }
 0x3ff   :  { %401 = vrot.lane.b32.xlu1 %v398_v58, %s1605_s14  ;;  %v399_v62 = vmul.f32 %v398_v58, %v301_v61 }
 0x471   :  { %v402_v59 = vpop.permute.xlu1 %401 }
 0x472   :  { %v404_v60 = vmul.f32 %v402_v59, %v398_v58 }
 0x474   :  { %406 = vrot.lane.b32.xlu0 %v404_v60, %s1608_s8 }
 0x4e6   :  { %v407_v63 = vpop.permute.xlu0 %406 }
 0x4e7   :  { %v409_v0 = vadd.f32 %v407_v63, %v399_v62 }
 0x4e9   :  { %1504 = vtanh.f32 %v409_v0  ;;  %v417_v32 = vsel %vm153_vm9, %v409_v0, %v301_v61  ;;  %v100_v0 = vld [vmem:[#allocation3 + $0x8] sm:$0x3] }
 0x4ea   :  { %v141_v4 = vsel %vm136_vm2, %v100_v0, %v124_v3 }
 0x4eb   :  { %v650_v5 = vpack.c.bf16 %v141_v4, %v141_v4 }
 0x4f3   :  { %v1505_v8 = vpop.eup %1504 }
 0x4f4   :  { %412 = vrot.lane.b32.xlu1 %v1505_v8, %s1605_s14 }
 0x566   :  { %v413_v10 = vpop.permute.xlu1 %412 }
 0x567   :  { %v415_v12 = vmul.f32 %v413_v10, %v398_v58 }
 0x569   :  { %v416_v13 = vsel %vm153_vm9, %v415_v12, %v300_v46 }
 0x56a   :  { %v462_v14 = vpack.c.bf16 %v416_v13, %v416_v13 }
 0x56c   :  { %464 = vrot.lane.b32.xlu0 %v462_v14, %s1608_s8 }
 0x5de   :  { %v465_v15 = vpop.permute.xlu0 %464 }
 0x5df   :  { %1358 = vmatmul.mubr.msk.bf16.vlgmr.msra.gmra.mrb[4].mxu0 %vm233_vm8, %v465_v15 }
 0x5e0   :  { %1376 = vmatpush3.bf16.msra.mxu0 %v1736_v6  ;;  %1377 = vmatprep.mubr.msk.bf16.mxu0 %vm1612_vm0, %v1611_v1 }
 0x5e1   :  { %1381 = vmatprep.subr.bf16.mxu0 %v1611_v1 }
 0x5e7   :  { %1378 = vmatmul.mubr.msk.bf16.vlgmr.msra.gmra.mrb[8].mxu0 %vm173_vm3, %v650_v5 }
 0x5e8   :  { %1382 = vmatpush3.bf16.msra.mxu0 %v1745_v9  ;;  %1385 = vmatprep.mubr.msk.bf16.mxu0 %vm1612_vm0, %v1611_v1 }
 0x5e9   :  { %1383 = vmatprep.subr.bf16.mxu0 %v1611_v1 }
 0x5ec   :  { %1384 = vmatpush3.bf16.msra.mxu0 %v1753_v11 }
 0x5ed   :  { %1403 = vmatprep.subr.bf16.mxu0 %v1611_v1 }
 0x6b2   :  { %v503_v16 = vpop.f32.mrb[4].mxu0 }
 0x6b3   :  { %v1441_v20 = vadd.f32 %v1782_v19, %v503_v16  ;;  %v1359_v22 = vpop.f32.mrb[5].mxu0 }
 0x6b4   :  { %v506_v23 = vpop.f32.mrb[6].mxu0 }
 0x6b5   :  { %v510_v24 = vmul.f32 %v1441_v20, %v1786_v21  ;;  %v1360_v25 = vpop.f32.mrb[7].mxu0 }
 0x6b7   :  { %1506 = vtanh.f32 %v510_v24 }
 0x6c1   :  { %v1507_v26 = vpop.eup %1506 }
 0x6c2   :  { %v512_v27 = vmul.f32 0.5, %v1507_v26 }
 0x6c4   :  { %v513_v28 = vadd.f32 0.5, %v512_v27 }
 0x6c6   :  { %v514_v29 = vsel %vm1775_vm6, %v1507_v26, %v513_v28 }
 0x6c7   :  { %517 = vrot.lane.b32.xlu1 %v514_v29, %s1605_s14  ;;  %v515_v33 = vmul.f32 %v514_v29, %v417_v32 }
 0x739   :  { %v518_v30 = vpop.permute.xlu1 %517 }
 0x73a   :  { %v520_v31 = vmul.f32 %v518_v30, %v514_v29 }
 0x73c   :  { %522 = vrot.lane.b32.xlu0 %v520_v31, %s1608_s8 }
 0x7ae   :  { %v523_v34 = vpop.permute.xlu0 %522 }
 0x7af   :  { %v525_v35 = vadd.f32 %v523_v34, %v515_v33 }
 0x7b1   :  { %1508 = vtanh.f32 %v525_v35  ;;  %v533_v60 = vsel %vm154_vm10, %v525_v35, %v417_v32  ;;  %v101_v35 = vld [vmem:[#allocation3 + $0xa] sm:$0x3] }
 0x7b2   :  { %v142_v38 = vsel %vm136_vm2, %v101_v35, %v125_v37 }
 0x7b3   :  { %v766_v39 = vpack.c.bf16 %v142_v38, %v142_v38 }
 0x7bb   :  { %v1509_v41 = vpop.eup %1508 }
 0x7bc   :  { %528 = vrot.lane.b32.xlu1 %v1509_v41, %s1605_s14 }
 0x82e   :  { %v529_v42 = vpop.permute.xlu1 %528 }
 0x82f   :  { %v531_v44 = vmul.f32 %v529_v42, %v514_v29 }
 0x831   :  { %v532_v45 = vsel %vm154_vm10, %v531_v44, %v416_v13 }
 0x832   :  { %v578_v46 = vpack.c.bf16 %v532_v45, %v532_v45 }
 0x834   :  { %580 = vrot.lane.b32.xlu0 %v578_v46, %s1608_s8 }
 0x8a6   :  { %v581_v47 = vpop.permute.xlu0 %580 }
 0x8a7   :  { %1372 = vmatmul.mubr.msk.bf16.vlgmr.msra.gmra.mrb[4].mxu1 %vm233_vm8, %v581_v47 }
 0x8a8   :  { %1390 = vmatpush3.bf16.msra.mxu1 %v1736_v6  ;;  %1391 = vmatprep.mubr.msk.bf16.mxu1 %vm1612_vm0, %v1611_v1 }
 0x8a9   :  { %1395 = vmatprep.subr.bf16.mxu1 %v1611_v1 }
 0x8af   :  { %1392 = vmatmul.mubr.msk.bf16.vlgmr.msra.gmra.mrb[8].mxu1 %vm173_vm3, %v766_v39 }
 0x8b0   :  { %1396 = vmatpush3.bf16.msra.mxu1 %v1745_v9  ;;  %1399 = vmatprep.mubr.msk.bf16.mxu1 %vm1612_vm0, %v1611_v1 }
 0x8b1   :  { %1397 = vmatprep.subr.bf16.mxu1 %v1611_v1 }
 0x8b4   :  { %1398 = vmatpush3.bf16.msra.mxu1 %v1753_v11 }
 0x8b5   :  { %1417 = vmatprep.subr.bf16.mxu1 %v1611_v1 }
 0x97a   :  { %v619_v48 = vpop.f32.mrb[4].mxu1 }
 0x97b   :  { %v1442_v49 = vadd.f32 %v1782_v19, %v619_v48  ;;  %v1373_v50 = vpop.f32.mrb[5].mxu1 }
 0x97c   :  { %v622_v51 = vpop.f32.mrb[6].mxu1 }
 0x97d   :  { %v626_v52 = vmul.f32 %v1442_v49, %v1786_v21  ;;  %v1374_v53 = vpop.f32.mrb[7].mxu1 }
 0x97f   :  { %1510 = vtanh.f32 %v626_v52 }
 0x989   :  { %v1511_v54 = vpop.eup %1510 }
 0x98a   :  { %v628_v55 = vmul.f32 0.5, %v1511_v54 }
 0x98c   :  { %v629_v56 = vadd.f32 0.5, %v628_v55 }
 0x98e   :  { %v630_v57 = vsel %vm1775_vm6, %v1511_v54, %v629_v56 }
 0x98f   :  { %633 = vrot.lane.b32.xlu1 %v630_v57, %s1605_s14  ;;  %v631_v61 = vmul.f32 %v630_v57, %v533_v60 }
 0xa01   :  { %v634_v58 = vpop.permute.xlu1 %633 }
 0xa02   :  { %v636_v59 = vmul.f32 %v634_v58, %v630_v57 }
 0xa04   :  { %638 = vrot.lane.b32.xlu0 %v636_v59, %s1608_s8 }
 0xa76   :  { %v639_v62 = vpop.permute.xlu0 %638 }
 0xa77   :  { %v641_v63 = vadd.f32 %v639_v62, %v631_v61  ;;  %v102_v62 = vld [vmem:[#allocation3 + $0xc] sm:$0x3] }
 0xa79   :  { %1512 = vtanh.f32 %v641_v63  ;;  %v649_v31 = vsel %vm155_vm11, %v641_v63, %v533_v60  ;;  %v110_v63 = vld [vmem:[%s2009_s1 + $0xc] sm:$0x3] }
 0xa7a   :  { %v126_v0 = vrot.slane %v110_v63, 6  ;;  %v1270_v63 = vld [vmem:[#allocation7] ss:$0 sm:$0xff] }
 0xa7c   :  { %v143_v2 = vsel %vm136_vm2, %v102_v62, %v126_v0 }
 0xa7d   :  { %v882_v3 = vpack.c.bf16 %v143_v2, %v143_v2 }
 0xa83   :  { %v1513_v7 = vpop.eup %1512 }
 0xa84   :  { %644 = vrot.lane.b32.xlu1 %v1513_v7, %s1605_s14 }
 0xaf6   :  { %v645_v8 = vpop.permute.xlu1 %644 }
 0xaf7   :  { %v647_v10 = vmul.f32 %v645_v8, %v630_v57 }
 0xaf9   :  { %v648_v12 = vsel %vm155_vm11, %v647_v10, %v532_v45 }
 0xafa   :  { %v694_v13 = vpack.c.bf16 %v648_v12, %v648_v12 }
 0xafc   :  { %696 = vrot.lane.b32.xlu0 %v694_v13, %s1608_s8 }
 0xb6e   :  { %v697_v14 = vpop.permute.xlu0 %696 }
 0xb6f   :  { %1386 = vmatmul.mubr.msk.bf16.vlgmr.msra.gmra.mrb[8].mxu0 %vm233_vm8, %v697_v14 }
 0xb70   :  { %1404 = vmatpush3.bf16.msra.mxu0 %v1736_v6  ;;  %1405 = vmatprep.mubr.msk.bf16.mxu0 %vm1612_vm0, %v1611_v1 }
 0xb71   :  { %1409 = vmatprep.subr.bf16.mxu0 %v1611_v1 }
 0xb77   :  { %1406 = vmatmul.mubr.msk.bf16.vlgmr.msra.gmra.mrb[12].mxu0 %vm173_vm3, %v882_v3 }
 0xb78   :  { %1410 = vmatpush3.bf16.msra.mxu0 %v1745_v9  ;;  %1413 = vmatprep.mubr.msk.bf16.mxu0 %vm1612_vm0, %v1611_v1 }
 0xb79   :  { %1411 = vmatprep.subr.bf16.mxu0 %v1611_v1 }
 0xb7c   :  { %1412 = vmatpush3.bf16.msra.mxu0 %v1753_v11 }
 0xb7d   :  { %1431 = vmatprep.subr.bf16.mxu0 %v1611_v1 }
 0xc42   :  { %v735_v15 = vpop.f32.mrb[8].mxu0 }
 0xc43   :  { %v1443_v16 = vadd.f32 %v1782_v19, %v735_v15  ;;  %v1387_v20 = vpop.f32.mrb[9].mxu0 }
 0xc44   :  { %v738_v22 = vpop.f32.mrb[10].mxu0 }
 0xc45   :  { %v742_v23 = vmul.f32 %v1443_v16, %v1786_v21  ;;  %v1388_v24 = vpop.f32.mrb[11].mxu0 }
 0xc47   :  { %1514 = vtanh.f32 %v742_v23 }
 0xc51   :  { %v1515_v25 = vpop.eup %1514 }
 0xc52   :  { %v744_v26 = vmul.f32 0.5, %v1515_v25 }
 0xc54   :  { %v745_v27 = vadd.f32 0.5, %v744_v26 }
 0xc56   :  { %v746_v28 = vsel %vm1775_vm6, %v1515_v25, %v745_v27 }
 0xc57   :  { %749 = vrot.lane.b32.xlu1 %v746_v28, %s1605_s14  ;;  %v747_v32 = vmul.f32 %v746_v28, %v649_v31 }
 0xcc9   :  { %v750_v29 = vpop.permute.xlu1 %749 }
 0xcca   :  { %v752_v30 = vmul.f32 %v750_v29, %v746_v28 }
 0xccc   :  { %754 = vrot.lane.b32.xlu0 %v752_v30, %s1608_s8 }
 0xd3e   :  { %v755_v33 = vpop.permute.xlu0 %754 }
 0xd3f   :  { %v757_v34 = vadd.f32 %v755_v33, %v747_v32  ;;  %v103_v33 = vld [vmem:[#allocation3 + $0xe] sm:$0x3] }
 0xd41   :  { %1516 = vtanh.f32 %v757_v34  ;;  %v765_v58 = vsel %vm156_vm12, %v757_v34, %v649_v31  ;;  %v111_v34 = vld [vmem:[%s2009_s1 + $0xe] sm:$0x3] }
 0xd42   :  { %v127_v35 = vrot.slane %v111_v34, 6 }
 0xd44   :  { %v144_v36 = vsel %vm136_vm2, %v103_v33, %v127_v35 }
 0xd45   :  { %v998_v37 = vpack.c.bf16 %v144_v36, %v144_v36 }
 0xd4b   :  { %v1517_v40 = vpop.eup %1516 }
 0xd4c   :  { %760 = vrot.lane.b32.xlu1 %v1517_v40, %s1605_s14 }
 0xdbe   :  { %v761_v41 = vpop.permute.xlu1 %760 }
 0xdbf   :  { %v763_v42 = vmul.f32 %v761_v41, %v746_v28 }
 0xdc1   :  { %v764_v44 = vsel %vm156_vm12, %v763_v42, %v648_v12 }
 0xdc2   :  { %v810_v45 = vpack.c.bf16 %v764_v44, %v764_v44 }
 0xdc4   :  { %812 = vrot.lane.b32.xlu0 %v810_v45, %s1608_s8 }
 0xe36   :  { %v813_v46 = vpop.permute.xlu0 %812 }
 0xe37   :  { %1400 = vmatmul.mubr.msk.bf16.vlgmr.msra.gmra.mrb[8].mxu1 %vm233_vm8, %v813_v46 }
 0xe38   :  { %1418 = vmatpush3.bf16.msra.mxu1 %v1736_v6  ;;  %1419 = vmatprep.mubr.msk.bf16.mxu1 %vm1612_vm0, %v1611_v1 }
 0xe39   :  { %1423 = vmatprep.subr.bf16.mxu1 %v1611_v1 }
 0xe3f   :  { %1420 = vmatmul.mubr.msk.bf16.vlgmr.msra.gmra.mrb[12].mxu1 %vm173_vm3, %v998_v37  ;;  %vm1220_vm3 = vcmask 1024  }
 0xe40   :  { %1424 = vmatpush3.bf16.msra.mxu1 %v1745_v9  ;;  %1427 = vmatprep.mubr.msk.bf16.mxu1 %vm1612_vm0, %v1611_v1 }
 0xe41   :  { %1425 = vmatprep.subr.bf16.mxu1 %v1611_v1 }
 0xe44   :  { %1426 = vmatpush3.bf16.msra.mxu1 %v1753_v11 }
 0xf0a   :  { %v851_v47 = vpop.f32.mrb[8].mxu1 }
 0xf0b   :  { %v1444_v48 = vadd.f32 %v1782_v19, %v851_v47  ;;  %v1401_v49 = vpop.f32.mrb[9].mxu1 }
 0xf0c   :  { %v854_v50 = vpop.f32.mrb[10].mxu1 }
 0xf0d   :  { %v858_v51 = vmul.f32 %v1444_v48, %v1786_v21  ;;  %v1402_v52 = vpop.f32.mrb[11].mxu1 }
 0xf0f   :  { %1518 = vtanh.f32 %v858_v51 }
 0xf19   :  { %v1519_v53 = vpop.eup %1518 }
 0xf1a   :  { %v860_v54 = vmul.f32 0.5, %v1519_v53 }
 0xf1c   :  { %v861_v55 = vadd.f32 0.5, %v860_v54 }
 0xf1e   :  { %v862_v6 = vsel %vm1775_vm6, %v1519_v53, %v861_v55 }
 0xf1f   :  { %865 = vrot.lane.b32.xlu1 %v862_v6, %s1605_s14  ;;  %v863_v59 = vmul.f32 %v862_v6, %v765_v58 }
 0xf91   :  { %v866_v56 = vpop.permute.xlu1 %865 }
 0xf92   :  { %v868_v57 = vmul.f32 %v866_v56, %v862_v6  ;;  %v1496_v56 = vld [vmem:[#allocation5] sm:$0xff]  }
 0xf94   :  { %870 = vrot.lane.b32.xlu0 %v868_v57, %s1608_s8  ;;  %v1497_v57 = vld [vmem:[#allocation5 + $0x8] sm:$0xff]  }
0x1006   :  { %v871_v60 = vpop.permute.xlu0 %870 }
0x1007   :  { %v873_v61 = vadd.f32 %v871_v60, %v863_v59 }
0x1009   :  { %1520 = vtanh.f32 %v873_v61  ;;  %v881_v29 = vsel %vm157_vm13, %v873_v61, %v765_v58 }
0x1013   :  { %v1521_v4 = vpop.eup %1520 }
0x1014   :  { %876 = vrot.lane.b32.xlu1 %v1521_v4, %s1605_s14  ;;  %v1274_v4 = vld [vmem:[%s2018_s10] ss:$0 sm:$0xff] }
0x1086   :  { %v877_v5 = vpop.permute.xlu1 %876 }
0x1087   :  { %v879_v7 = vmul.f32 %v877_v5, %v862_v6 }
0x1089   :  { %v880_v8 = vsel %vm157_vm13, %v879_v7, %v764_v44 }
0x108a   :  { %v926_v10 = vpack.c.bf16 %v880_v8, %v880_v8 }
0x108c   :  { %928 = vrot.lane.b32.xlu0 %v926_v10, %s1608_s8  ;;  %v1275_v10 = vld [vmem:[#allocation2] ss:$0 sm:$0xff] }
0x10fe   :  { %v929_v12 = vpop.permute.xlu0 %928 }
0x10ff   :  { %1414 = vmatmul.mubr.msk.bf16.vlgmr.msra.gmra.mrb[12].mxu0 %vm233_vm8, %v929_v12 }
0x1100   :  { %1435 = vmatprep.mubr.msk.bf16.mxu0 %vm1612_vm0, %v1611_v1  ;;  %1432 = vmatpush3.bf16.msra.mxu0 %v1496_v56  ;;  %vm1186_vm0 = vcmask 257024  }
0x1101   :  { %1433 = vmatprep.subr.bf16.mxu0 %v1611_v1 }
0x1104   :  { %1434 = vmatpush3.bf16.msra.mxu0 %v1497_v57 }
0x11d2   :  { %v967_v13 = vpop.f32.mrb[12].mxu0 }
0x11d3   :  { %v1445_v14 = vadd.f32 %v1782_v19, %v967_v13  ;;  %v1415_v15 = vpop.f32.mrb[13].mxu0 }
0x11d4   :  { %v970_v16 = vpop.f32.mrb[14].mxu0 }
0x11d5   :  { %v974_v20 = vmul.f32 %v1445_v14, %v1786_v21  ;;  %v1416_v22 = vpop.f32.mrb[15].mxu0 }
0x11d7   :  { %1522 = vtanh.f32 %v974_v20 }
0x11e1   :  { %v1523_v23 = vpop.eup %1522 }
0x11e2   :  { %v976_v24 = vmul.f32 0.5, %v1523_v23 }
0x11e4   :  { %v977_v25 = vadd.f32 0.5, %v976_v24 }
0x11e6   :  { %v978_v26 = vsel %vm1775_vm6, %v1523_v23, %v977_v25 }
0x11e7   :  { %981 = vrot.lane.b32.xlu1 %v978_v26, %s1605_s14  ;;  %v979_v30 = vmul.f32 %v978_v26, %v881_v29 }
0x1259   :  { %v982_v27 = vpop.permute.xlu1 %981 }
0x125a   :  { %v984_v28 = vmul.f32 %v982_v27, %v978_v26 }
0x125c   :  { %986 = vrot.lane.b32.xlu0 %v984_v28, %s1608_s8 }
0x12ce   :  { %v987_v31 = vpop.permute.xlu0 %986 }
0x12cf   :  { %v989_v32 = vadd.f32 %v987_v31, %v979_v30 }
0x12d1   :  { %1524 = vtanh.f32 %v989_v32 }
0x12db   :  { %v1525_v38 = vpop.eup %1524 }
0x12dc   :  { %992 = vrot.lane.b32.xlu1 %v1525_v38, %s1605_s14 }
0x134e   :  { %v993_v39 = vpop.permute.xlu1 %992 }
0x134f   :  { %v995_v40 = vmul.f32 %v993_v39, %v978_v26  ;;  %v1197_v26 = vld [vmem:[%s2012_s4] sm:$0x3] }
0x1350   :  { %v1202_v30 = vsub.f32 0.0, %v1197_v26 }
0x1351   :  { %v996_v41 = vsel %vm158_vm14, %v995_v40, %v880_v8 }
0x1352   :  { %v1042_v42 = vpack.c.bf16 %v996_v41, %v996_v41 }
0x1354   :  { %1044 = vrot.lane.b32.xlu0 %v1042_v42, %s1608_s8 }
0x13c6   :  { %v1045_v9 = vpop.permute.xlu0 %1044 }
0x13c7   :  { %1428 = vmatmul.mubr.msk.bf16.vlgmr.msra.gmra.mrb[12].mxu1 %vm233_vm8, %v1045_v9 }
0x149a   :  { %v1083_v44 = vpop.f32.mrb[12].mxu1 }
0x149b   :  { %v1446_v45 = vadd.f32 %v1782_v19, %v1083_v44  ;;  %v1429_v46 = vpop.f32.mrb[13].mxu1  ;;  %v997_v19 = vsel %vm158_vm14, %v989_v32, %v881_v29 }
0x149c   :  { %v1086_v47 = vpop.f32.mrb[14].mxu1 }
0x149d   :  { %v1090_v11 = vmul.f32 %v1446_v45, %v1786_v21  ;;  %v1430_v48 = vpop.f32.mrb[15].mxu1 }
0x149f   :  { %1526 = vtanh.f32 %v1090_v11 }
0x14a9   :  { %v1527_v49 = vpop.eup %1526 }
0x14aa   :  { %v1092_v50 = vmul.f32 0.5, %v1527_v49 }
0x14ac   :  { %v1093_v51 = vadd.f32 0.5, %v1092_v50 }
0x14ae   :  { %v1094_v52 = vsel %vm1775_vm6, %v1527_v49, %v1093_v51 }
0x14af   :  { %1097 = vrot.lane.b32.xlu1 %v1094_v52, %s1605_s14  ;;  %v1095_v55 = vmul.f32 %v1094_v52, %v997_v19 }
0x1521   :  { %v1098_v53 = vpop.permute.xlu1 %1097 }
0x1522   :  { %v1100_v54 = vmul.f32 %v1098_v53, %v1094_v52 }
0x1524   :  { %1102 = vrot.lane.b32.xlu0 %v1100_v54, %s1608_s8 }
0x1596   :  { %v1103_v6 = vpop.permute.xlu0 %1102 }
0x1597   :  { %v1105_v21 = vadd.f32 %v1103_v6, %v1095_v55 }
0x1599   :  { %1528 = vtanh.f32 %v1105_v21 }
0x15a3   :  { %v1529_v18 = vpop.eup %1528 }
0x15a4   :  { %1108 = vrot.lane.b32.xlu1 %v1529_v18, %s1605_s14 }
0x1616   :  { %v1109_v58 = vpop.permute.xlu1 %1108 }
0x1617   :  { %v1111_v59 = vmul.f32 %v1109_v58, %v1094_v52 }
0x1619   :  { %v1112_v60 = vsel %vm159_vm15, %v1111_v59, %v996_v41 }
0x161a   :  { %v1113_v61 = vpack.c.bf16 %v1112_v60, %v1112_v60 }
0x161c   :  { %1121 = vrot.lane.b32.xlu0 %v1113_v61, %s1608_s8 }
0x168e   :  { %v1122_v62 = vpop.permute.xlu0 %1121 }
0x168f   :  { %1436 = vmatmul.mubr.msk.bf16.vlgmr.msra.gmra.mrb[16].mxu0 %vm233_vm8, %v1122_v62 }
0x1762   :  { %v1172_v0 = vpop.f32.mrb[16].mxu0 }
0x1763   :  { %v1173_v2 = vadd.f32 %v1270_v63, %v1172_v0  ;;  %v1437_v3 = vpop.f32.mrb[17].mxu0 }
0x1764   :  { %v1175_v1 = vpop.f32.mrb[18].mxu0 }
0x1765   :  { %v1178_v5 = vmax.f32 %v1173_v2, 0.0  ;;  %v1438_v7 = vpop.f32.mrb[19].mxu0 }
0x1767   :  { %v1185_v43 = vmul.f32 %v1274_v4, %v1178_v5 }
0x1769   :  { %v1187_v8 = vsel %vm1186_vm0, %v1185_v43, 0.0 }
0x176a   :  { %1188 = vadd.xlane.f32.xlu1 %v1187_v8 }
0x17f7   :  { %v1189_v12 = vpop.xlane.xlu1 %1188 }
0x17f8   :  { %v1196_v13 = vadd.f32 %v1275_v10, %v1189_v12 }
0x17fa   :  { %v1199_v14 = vrot.slane %v1196_v13, 2 }
0x17fc   :  { %v1201_v15 = vsub.f32 %v1196_v13, %v1199_v14 }
0x17fe   :  { %v1205_v16 = vand.u32 2147483647, %v1201_v15  ;;  %v1204_v33 = vmax.f32 %v1201_v15, 0.0  ;;  %v1203_v35 = vmul.f32 %v1202_v30, %v1201_v15 }
0x1800   :  { %v1206_v20 = vsub.f32 0.0, %v1205_v16 }
0x1802   :  { %v1207_v22 = vmul.f32 1.442695, %v1206_v20 }
0x1804   :  { %1530 = vpow2.f32 %v1207_v22 }
0x180e   :  { %v1531_v23 = vpop.eup %1530 }
0x180f   :  { %v1209_v24 = vadd.f32 1.0, %v1531_v23  ;;  %v1212_v25 = vmul.f32 -0.5, %v1531_v23  ;;  %v1215_v28 = vand.u32 2147483647, %v1531_v23 }
0x1811   :  { %1532 = vlog2.f32 %v1209_v24  ;;  %v1213_v27 = vadd.f32 1.0, %v1212_v25  ;;  %vm1216_vm2 = vcmp.lt.f32.partialorder %v1215_v28, 0.0004427343 }
0x1813   :  { %v1214_v32 = vmul.f32 %v1531_v23, %v1213_v27 }
0x181b   :  { %v1533_v29 = vpop.eup %1532 }
0x181c   :  { %v1211_v31 = vmul.f32 0.6931472, %v1533_v29 }
0x181e   :  { %v1217_v34 = vsel %vm1216_vm2, %v1214_v32, %v1211_v31 }
0x181f   :  { %v1218_v36 = vadd.f32 %v1217_v34, %v1204_v33 }
0x1821   :  { %v1219_v37 = vadd.f32 %v1218_v36, %v1203_v35 }
0x1823   :  { %v1221_v38 = vsel %vm1220_vm3, %v1219_v37, 0.0 }
0x1824   :  { %1222 = vadd.xlane.f32.xlu0 %v1221_v38 }
0x18b1   :  { %v1223_v39 = vpop.xlane.xlu0 %1222 }
0x18b2   :  { %v1224_v40 = vrot.slane %v1223_v39, 4 }
0x18b4   :  { %v1225_v41 = vadd.f32 %v1224_v40, %v1223_v39 }
0x18b6   :  { %v1226_v42 = vrot.slane %v1225_v41, 2 }
0x18b8   :  { %v1227_v9 = vadd.f32 %v1226_v42, %v1225_v41 }
0x18ba   :  { %v1228_v44 = vrot.slane %v1227_v9, 1 }
0x18bc   :  { %v1229_v45 = vadd.f32 %v1228_v44, %v1227_v9 }
0x18be   :  { %1479 = vpush %v1229_v45 }
0x18ef   :  { %s1480_s4 = spop %1479 }
0x18f0   :  { %s1233_s8 = smul.f32 0.5, %s1480_s4 }
0x18f2   :  { %v1234_v46 = vstv %s1233_s8 }
0x18f3   :  { %v1235_v47 = vsel %vm177_vm1, %v1196_v13, %v1234_v46 }
0x18f4   :  { %v1237_v11 = vsel %vm1236_vm4, %v1235_v47, 0.0 }
0x18f5   :  { %1241 = vperm.xlu0 %1493, %v1237_v11  }
0x1974   :  { %v1242_v48 = vpop.permute.xlu0 %1241 }
0x1975   :  { %v1244_v49 = vsel %vm1238_vm5, %v1242_v48, 0.0 }
0x1976   :  { %1245 = vst [vmem:[%s2020_s12] sm:$0xff] %v1244_v49 }
0x1977   :  { %1250 = vsyncpa [#allocation4], 1 }
0x1978   :  { %1251 = vsyncpa [#allocation6], 1 }

</bundles_post_ra>
